<compile_context>
chip_gen: v6e
topology: v6e:2x2x1
jax: 0.10.0
libtpu: 0.0.40
codegen_flags: <defaults>
</compile_context>

<pallas_src>
import math

import jax
import jax.numpy as jnp
from jax import lax
from jax.experimental import pallas as pl
from jax.experimental.pallas import tpu as pltpu


def _round_up(x: int, m: int) -> int:
    return ((x + m - 1) // m) * m


# ---------------------------------------------------------------------------
# Kernel 1: fused QKV projection (computed ONCE — not per q-tile).
# ---------------------------------------------------------------------------
def _qkv_proj_kernel(x_ref, wq_ref, wk_ref, wv_ref, q_ref, k_ref, v_ref):
    xm = x_ref[0]                                                    # (tm, C)
    # softmax scale already folded into wq at weight-prep time.
    q_ref[0] = jnp.dot(xm, wq_ref[...],
                       preferred_element_type=jnp.float32).astype(q_ref.dtype)
    k_ref[0] = jnp.dot(xm, wk_ref[...],
                       preferred_element_type=jnp.float32).astype(k_ref.dtype)
    v_ref[0] = jnp.dot(xm, wv_ref[...],
                       preferred_element_type=jnp.float32).astype(v_ref.dtype)


# ---------------------------------------------------------------------------
# Kernel 2: flash attention (online softmax) + output projection + bias.
# ---------------------------------------------------------------------------
def _make_flash_kernel(num_heads: int, head_dim: int, seq_len: int,
                       padded_len: int, block_kv: int, compute_dtype):
    H, D = num_heads, head_dim
    needs_mask = padded_len != seq_len          # static: emit mask code or not

    def kernel(q_ref, k_ref, v_ref, wp_ref, bp_ref, o_ref,
               acc_scr, m_scr, l_scr, o_scr):
        ki = pl.program_id(2)
        nk = pl.num_programs(2)

        # ---- init per (batch, q-tile): reset online-softmax state
        @pl.when(ki == 0)
        def _init():
            m_scr[...] = jnp.full(m_scr.shape, -jnp.inf, m_scr.dtype)
            l_scr[...] = jnp.zeros(l_scr.shape, l_scr.dtype)
            acc_scr[...] = jnp.zeros(acc_scr.shape, acc_scr.dtype)

        if needs_mask:
            kv_idx = ki * block_kv + lax.broadcasted_iota(
                jnp.int32, (1, block_kv), 1)
            kv_valid = kv_idx < seq_len          # (1, tk) — broadcasts over rows

        # ---- per-head online-softmax update.  Head slices are loaded straight
        # from the VMEM input refs: only one (tq,D)/(tk,D) slice is live at a
        # time (no full-width q/k/v values → no vreg spill at large C).
        for h in range(H):
            qh = q_ref[0, :, h * D:(h + 1) * D]                      # (tq, D)
            kh = k_ref[0, :, h * D:(h + 1) * D]                      # (tk, D)
            # contract over the last dim of BOTH operands -> no K transpose.
            s = lax.dot_general(qh, kh, (((1,), (1,)), ((), ())),
                                preferred_element_type=jnp.float32)  # (tq, tk)
            if needs_mask:
                s = jnp.where(kv_valid, s, -jnp.inf)

            m_prev = m_scr[:, h:h + 1]                               # (tq, 1)
            l_prev = l_scr[:, h:h + 1]                               # (tq, 1)
            m_new = jnp.maximum(m_prev, jnp.max(s, axis=-1, keepdims=True))
            alpha = jnp.exp(m_prev - m_new)                          # (tq, 1)
            p = jnp.exp(s - m_new)                                   # (tq, tk)
            l_scr[:, h:h + 1] = alpha * l_prev + jnp.sum(p, axis=-1,
                                                         keepdims=True)
            vh = v_ref[0, :, h * D:(h + 1) * D]                      # (tk, D)
            acc_scr[h] = alpha * acc_scr[h] + jnp.dot(
                p.astype(compute_dtype), vh,
                preferred_element_type=jnp.float32)
            m_scr[:, h:h + 1] = m_new

        # ---- finalize: normalize into a (tq, C) slab, then ONE deep matmul
        # with Wproj (contraction depth C fills the MXU far better than H
        # shallow depth-D dots, and avoids a spilled (tq, C) f32 register
        # accumulator).
        @pl.when(ki == nk - 1)
        def _finalize():
            for h in range(H):
                inv_l = pl.reciprocal(l_scr[:, h:h + 1], approx=True)  # EUP
                o_scr[:, h * D:(h + 1) * D] = (
                    acc_scr[h] * inv_l).astype(o_scr.dtype)
            y = jnp.dot(o_scr[...], wp_ref[...],
                        preferred_element_type=jnp.float32)            # (tq, C)
            o_ref[0] = (y + bp_ref[...]).astype(o_ref.dtype)

    return kernel


# ---------------------------------------------------------------------------
# Wrapper
# ---------------------------------------------------------------------------
def attention_forward(x, w_qkv, w_proj, b_proj, num_heads: int,
                      *, block_q=None, block_kv=None):
    """x: (B, N, C); w_qkv: (3C, C) torch layout; w_proj: (C, C); b_proj: (C,).

    Matmul operands use x.dtype (pass bf16 x for bf16 MXU on v6e/v7x);
    accumulation and softmax statistics are always f32.
    On v6e, pass block_q=block_kv=256 (128 MiB VMEM / 256-wide MXU).
    """
    B, N, C = x.shape
    assert C % num_heads == 0, "dim should be divisible by num_heads"
    D = C // num_heads
    scale = D ** -0.5
    cdt = x.dtype

    w_qkv = jnp.asarray(w_qkv)
    w_proj = jnp.asarray(w_proj)
    b_proj = jnp.asarray(b_proj)

    # nn.Linear weight layout is (out_features, in_features): present transposed
    # so the kernels do plain x @ W.  Fold the softmax scale into the Q weight.
    # NOTE: scale is applied before the cast to the compute dtype; on the bf16
    # path this introduces tiny drift vs. scaling after QK^T in f32.
    wq_t = (w_qkv[:C, :].T.astype(jnp.float32) * scale).astype(cdt)
    wk_t = w_qkv[C:2 * C, :].T.astype(cdt)
    wv_t = w_qkv[2 * C:, :].T.astype(cdt)
    wp_t = w_proj.T.astype(cdt)
    bp = b_proj.reshape(1, C).astype(jnp.float32)

    # ---- tiles & padding (non-divisible N handled by pad + in-kernel mask)
    tq = _round_up(block_q or min(128, _round_up(N, 8)), 8)
    tk = _round_up(block_kv or min(128, _round_up(N, 8)), 8)
    n_pad = _round_up(N, math.lcm(tq, tk))
    x_p = jnp.pad(x, ((0, 0), (0, n_pad - N), (0, 0))) if n_pad != N else x
    nq, nk = n_pad // tq, n_pad // tk

    const2 = lambda *idx: (0, 0)

    # Resident weights: constant index_map + single buffering (no dead 2x copy).
    def _weight_spec(shape):
        return pl.BlockSpec(shape, const2, pipeline_mode=pl.Buffered(1))

    # -------------------- call 1: QKV projection --------------------
    q, k, v = pl.pallas_call(
        _qkv_proj_kernel,
        out_shape=(jax.ShapeDtypeStruct((B, n_pad, C), cdt),
                   jax.ShapeDtypeStruct((B, n_pad, C), cdt),
                   jax.ShapeDtypeStruct((B, n_pad, C), cdt)),
        grid=(B, n_pad // tq),
        in_specs=[
            pl.BlockSpec((1, tq, C), lambda b, i: (b, i, 0)),         # x rows
            _weight_spec((C, C)),                                     # Wq (scaled)
            _weight_spec((C, C)),                                     # Wk
            _weight_spec((C, C)),                                     # Wv
        ],
        out_specs=(pl.BlockSpec((1, tq, C), lambda b, i: (b, i, 0)),
                   pl.BlockSpec((1, tq, C), lambda b, i: (b, i, 0)),
                   pl.BlockSpec((1, tq, C), lambda b, i: (b, i, 0))),
        compiler_params=pltpu.CompilerParams(
            dimension_semantics=("parallel", "parallel"),
            vmem_limit_bytes=32 * 1024 * 1024,
        ),
    )(x_p, wq_t, wk_t, wv_t)

    # -------------------- call 2: flash attention + proj --------------------
    kernel = _make_flash_kernel(num_heads, D, N, n_pad, tk, cdt)

    out = pl.pallas_call(
        kernel,
        out_shape=jax.ShapeDtypeStruct((B, n_pad, C), cdt),
        grid=(B, nq, nk),
        in_specs=[
            pl.BlockSpec((1, tq, C), lambda b, qi, ki: (b, qi, 0)),   # Q tile
            pl.BlockSpec((1, tk, C), lambda b, qi, ki: (b, ki, 0)),   # K tile
            pl.BlockSpec((1, tk, C), lambda b, qi, ki: (b, ki, 0)),   # V tile
            _weight_spec((C, C)),                                     # Wproj
            _weight_spec((1, C)),                                     # bproj
        ],
        out_specs=pl.BlockSpec((1, tq, C), lambda b, qi, ki: (b, qi, 0)),
        scratch_shapes=[
            pltpu.VMEM((num_heads, tq, D), jnp.float32),   # acc per head
            pltpu.VMEM((tq, num_heads), jnp.float32),      # running max m (heads on lanes)
            pltpu.VMEM((tq, num_heads), jnp.float32),      # running denom l (heads on lanes)
            pltpu.VMEM((tq, C), cdt),                      # normalized-head slab
        ],
        compiler_params=pltpu.CompilerParams(
            dimension_semantics=("parallel", "parallel", "arbitrary"),
            # re-derived for v7x's 64 MiB per-TC budget (weights single-buffered)
            vmem_limit_bytes=40 * 1024 * 1024,
        ),
    )(q, k, v, wp_t, bp)

    return out[:, :N, :] if n_pad != N else out


# ---------------------------------------------------------------------------
# Plain-JAX reference mirroring the PyTorch forward (eval mode).
# ---------------------------------------------------------------------------
def attention_reference(x, w_qkv, w_proj, b_proj, num_heads: int):
    B, N, C = x.shape
    D = C // num_heads
    scale = D ** -0.5
    qkv = jnp.einsum("bnc,oc->bno", x, w_qkv)                  # (B, N, 3C)
    qkv = qkv.reshape(B, N, 3, num_heads, D).transpose(2, 0, 3, 1, 4)
    q, k, v = qkv[0], qkv[1], qkv[2]                           # (B, H, N, D)
    s = jnp.einsum("bhnd,bhmd->bhnm", q, k) * scale
    p = jax.nn.softmax(s, axis=-1)
    o = jnp.einsum("bhnm,bhmd->bhnd", p, v)                    # (B, H, N, D)
    o = o.transpose(0, 2, 1, 3).reshape(B, N, C)
    return jnp.einsum("bnc,oc->bno", o, w_proj) + b_proj


if __name__ == "__main__":
    # Small shapes consistent with the module: dim=32, num_heads=8 -> head_dim=4
    B, N, C = 2, 8, 32
    num_heads = 8

    key = jax.random.PRNGKey(0)
    kx, kqkv, kproj, kb = jax.random.split(key, 4)

    x = jax.random.normal(kx, (B, N, C), dtype=jnp.float32)
    # nn.Linear weight layout: (out_features, in_features)
    w_qkv = jax.random.normal(kqkv, (3 * C, C), dtype=jnp.float32) * 0.05
    w_proj = jax.random.normal(kproj, (C, C), dtype=jnp.float32) * 0.05
    b_proj = jax.random.normal(kb, (C,), dtype=jnp.float32) * 0.05

    ref = attention_reference(x, w_qkv, w_proj, b_proj, num_heads)

    # f32 matmul-operand path (tight check; approx reciprocal only loosens ~1e-4)
    out = jax.block_until_ready(
        attention_forward(x, w_qkv, w_proj, b_proj, num_heads))
    assert out.shape == (B, N, C)
    assert jnp.allclose(out, ref, atol=2e-3, rtol=2e-3), "f32 mismatch vs reference"

    # bf16 MXU-operand path (v6e/v7x recommendation): bf16 operands, f32 accumulation
    out_bf16 = jax.block_until_ready(
        attention_forward(x.astype(jnp.bfloat16), w_qkv, w_proj, b_proj, num_heads))
    assert jnp.allclose(out_bf16.astype(jnp.float32), ref, atol=5e-2, rtol=5e-2), \
        "bf16 mismatch vs reference"

    # Non-divisible sequence length (exercises pad + in-kernel kv masking path)
    N2 = 13
    x2 = jax.random.normal(kx, (B, N2, C), dtype=jnp.float32)
    ref2 = attention_reference(x2, w_qkv, w_proj, b_proj, num_heads)
    out2 = jax.block_until_ready(
        attention_forward(x2, w_qkv, w_proj, b_proj, num_heads))
    assert out2.shape == (B, N2, C)
    assert jnp.allclose(out2, ref2, atol=2e-3, rtol=2e-3), "ragged-N mismatch vs reference"

    print("KERNEL_OK")
</pallas_src>

<mosaic_0001>
module attributes {stable_mosaic.version = 11 : i64} {
  func.func @_qkv_proj_kernel(%arg0: i32, %arg1: i32, %arg2: memref<1x8x32xf32, #tpu.memory_space<vmem>>, %arg3: memref<32x32xf32, #tpu.memory_space<vmem>>, %arg4: memref<32x32xf32, #tpu.memory_space<vmem>>, %arg5: memref<32x32xf32, #tpu.memory_space<vmem>>, %arg6: memref<1x8x32xf32, #tpu.memory_space<vmem>>, %arg7: memref<1x8x32xf32, #tpu.memory_space<vmem>>, %arg8: memref<1x8x32xf32, #tpu.memory_space<vmem>>) attributes {dimension_semantics = [#tpu.dimension_semantics<parallel>, #tpu.dimension_semantics<parallel>], iteration_bounds = array<i64: 2, 1>, scalar_prefetch = 0 : i64, scratch_operands = 0 : i64, tpu.core_type = #tpu.core_type<tc>, window_params = [{transform_indices = @transform_0, window_bounds = array<i64: 1, 8, 32>}, {pipeline_mode = #tpu.pipeline_mode<synchronous>, transform_indices = @transform_1, window_bounds = array<i64: 32, 32>}, {pipeline_mode = #tpu.pipeline_mode<synchronous>, transform_indices = @transform_2, window_bounds = array<i64: 32, 32>}, {pipeline_mode = #tpu.pipeline_mode<synchronous>, transform_indices = @transform_3, window_bounds = array<i64: 32, 32>}, {transform_indices = @transform_4, window_bounds = array<i64: 1, 8, 32>}, {transform_indices = @transform_5, window_bounds = array<i64: 1, 8, 32>}, {transform_indices = @transform_6, window_bounds = array<i64: 1, 8, 32>}]} {
    %c0 = arith.constant 0 : index
    %c0_0 = arith.constant 0 : index
    %c0_1 = arith.constant 0 : index
    %0 = vector.load %arg2[%c0, %c0_0, %c0_1] : memref<1x8x32xf32, #tpu.memory_space<vmem>>, vector<1x8x32xf32>
    %1 = vector.shape_cast %0 : vector<1x8x32xf32> to vector<8x32xf32>
    %c0_2 = arith.constant 0 : index
    %c0_3 = arith.constant 0 : index
    %2 = vector.load %arg3[%c0_2, %c0_3] : memref<32x32xf32, #tpu.memory_space<vmem>>, vector<32x32xf32>
    %cst = arith.constant dense<0.000000e+00> : vector<8x32xf32>
    %3 = tpu.matmul %1, %2, %cst {dimension_numbers = #tpu.dot_dimension_numbers<[1], [0], [0], [1], [0, 0, 1, 1], [], []>} : vector<8x32xf32>, vector<32x32xf32>, vector<8x32xf32> -> vector<8x32xf32>
    %c0_4 = arith.constant 0 : index
    %c0_5 = arith.constant 0 : index
    %c0_6 = arith.constant 0 : index
    %4 = vector.load %arg6[%c0_4, %c0_5, %c0_6] : memref<1x8x32xf32, #tpu.memory_space<vmem>>, vector<1x8x32xf32>
    %5 = vector.shape_cast %4 : vector<1x8x32xf32> to vector<8x32xf32>
    %6 = vector.shape_cast %3 : vector<8x32xf32> to vector<1x8x32xf32>
    tpu.vector_store %arg6[%c0_4, %c0_5, %c0_6], %6 {strides = array<i32>} : memref<1x8x32xf32, #tpu.memory_space<vmem>>, vector<1x8x32xf32>,
    %c0_7 = arith.constant 0 : index
    %c0_8 = arith.constant 0 : index
    %7 = vector.load %arg4[%c0_7, %c0_8] : memref<32x32xf32, #tpu.memory_space<vmem>>, vector<32x32xf32>
    %cst_9 = arith.constant dense<0.000000e+00> : vector<8x32xf32>
    %8 = tpu.matmul %1, %7, %cst_9 {dimension_numbers = #tpu.dot_dimension_numbers<[1], [0], [0], [1], [0, 0, 1, 1], [], []>} : vector<8x32xf32>, vector<32x32xf32>, vector<8x32xf32> -> vector<8x32xf32>
    %c0_10 = arith.constant 0 : index
    %c0_11 = arith.constant 0 : index
    %c0_12 = arith.constant 0 : index
    %9 = vector.load %arg7[%c0_10, %c0_11, %c0_12] : memref<1x8x32xf32, #tpu.memory_space<vmem>>, vector<1x8x32xf32>
    %10 = vector.shape_cast %9 : vector<1x8x32xf32> to vector<8x32xf32>
    %11 = vector.shape_cast %8 : vector<8x32xf32> to vector<1x8x32xf32>
    tpu.vector_store %arg7[%c0_10, %c0_11, %c0_12], %11 {strides = array<i32>} : memref<1x8x32xf32, #tpu.memory_space<vmem>>, vector<1x8x32xf32>,
    %c0_13 = arith.constant 0 : index
    %c0_14 = arith.constant 0 : index
    %12 = vector.load %arg5[%c0_13, %c0_14] : memref<32x32xf32, #tpu.memory_space<vmem>>, vector<32x32xf32>
    %cst_15 = arith.constant dense<0.000000e+00> : vector<8x32xf32>
    %13 = tpu.matmul %1, %12, %cst_15 {dimension_numbers = #tpu.dot_dimension_numbers<[1], [0], [0], [1], [0, 0, 1, 1], [], []>} : vector<8x32xf32>, vector<32x32xf32>, vector<8x32xf32> -> vector<8x32xf32>
    %c0_16 = arith.constant 0 : index
    %c0_17 = arith.constant 0 : index
    %c0_18 = arith.constant 0 : index
    %14 = vector.load %arg8[%c0_16, %c0_17, %c0_18] : memref<1x8x32xf32, #tpu.memory_space<vmem>>, vector<1x8x32xf32>
    %15 = vector.shape_cast %14 : vector<1x8x32xf32> to vector<8x32xf32>
    %16 = vector.shape_cast %13 : vector<8x32xf32> to vector<1x8x32xf32>
    tpu.vector_store %arg8[%c0_16, %c0_17, %c0_18], %16 {strides = array<i32>} : memref<1x8x32xf32, #tpu.memory_space<vmem>>, vector<1x8x32xf32>,
    return
  }
  func.func @transform_0(%arg0: i32, %arg1: i32) -> (i32, i32, i32) {
    %c0_i32 = arith.constant 0 : i32
    %c0_i32_0 = arith.constant 0 : i32
    return %arg0, %arg1, %c0_i32 : i32, i32, i32
  }
  func.func @transform_1(%arg0: i32, %arg1: i32) -> (i32, i32) {
    %c0_i32 = arith.constant 0 : i32
    %c0_i32_0 = arith.constant 0 : i32
    %c0_i32_1 = arith.constant 0 : i32
    return %c0_i32, %c0_i32_0 : i32, i32
  }
  func.func @transform_2(%arg0: i32, %arg1: i32) -> (i32, i32) {
    %c0_i32 = arith.constant 0 : i32
    %c0_i32_0 = arith.constant 0 : i32
    %c0_i32_1 = arith.constant 0 : i32
    return %c0_i32, %c0_i32_0 : i32, i32
  }
  func.func @transform_3(%arg0: i32, %arg1: i32) -> (i32, i32) {
    %c0_i32 = arith.constant 0 : i32
    %c0_i32_0 = arith.constant 0 : i32
    %c0_i32_1 = arith.constant 0 : i32
    return %c0_i32, %c0_i32_0 : i32, i32
  }
  func.func @transform_4(%arg0: i32, %arg1: i32) -> (i32, i32, i32) {
    %c0_i32 = arith.constant 0 : i32
    %c0_i32_0 = arith.constant 0 : i32
    return %arg0, %arg1, %c0_i32 : i32, i32, i32
  }
  func.func @transform_5(%arg0: i32, %arg1: i32) -> (i32, i32, i32) {
    %c0_i32 = arith.constant 0 : i32
    %c0_i32_0 = arith.constant 0 : i32
    return %arg0, %arg1, %c0_i32 : i32, i32, i32
  }
  func.func @transform_6(%arg0: i32, %arg1: i32) -> (i32, i32, i32) {
    %c0_i32 = arith.constant 0 : i32
    %c0_i32_0 = arith.constant 0 : i32
    return %arg0, %arg1, %c0_i32 : i32, i32, i32
  }
}

</mosaic_0001>

<bundles_post_ra>
// kernel: tpu_custom_call.1
= control target key start
LH: loop header
LB: loop body
LE: loop exit
PB: predicated region body
PF: predicated region fallthrough
CT: control target
= control target key end

     0   :  { %s1567_s0 = inlined_call_operand.hbm [shape: f32[2,8,32], index: 0, kind: input, shape index: {}]   ;;  %s1568_s1 = inlined_call_operand.hbm [shape: f32[32,32], index: 1, kind: input, shape index: {}]   ;;  %s1569_s2 = inlined_call_operand.hbm [shape: f32[32,32], index: 2, kind: input, shape index: {}]   ;;  %s1570_s3 = inlined_call_operand.hbm [shape: f32[32,32], index: 3, kind: input, shape index: {}]   ;;  %s1571_s4 = inlined_call_operand.hbm [shape: f32[2,8,32], index: 4, kind: output, shape index: {0}]   ;;  %s1572_s5 = inlined_call_operand.hbm [shape: f32[2,8,32], index: 5, kind: output, shape index: {1}]   ;;  %s1573_s6 = inlined_call_operand.hbm [shape: f32[2,8,32], index: 6, kind: output, shape index: {2}]  }
   0x1   :  { %1578 = sst [smem:[#allocation19_spill]] %s1568_s1 }
   0x2   :  { %1579 = sst [smem:[#allocation20_spill]] %s1569_s2 }
   0x3   :  { %12 = vsyncpa [#allocation3], 0 }
   0x4   :  { %14 = vsyncpa [#allocation3 + $0x1], 0 }
   0x5   :  { %15 = vsyncpa [#allocation6], 0 }
   0x6   :  { %16 = vsyncpa [#allocation9], 0 }
   0x7   :  { %17 = vsyncpa [#allocation4], 0 }
   0x8   :  { %19 = vsyncpa [#allocation4 + $0x1], 0 }
   0x9   :  { %20 = vsyncpa [#allocation12], 0 }
   0xa   :  { %22 = vsyncpa [#allocation12 + $0x1], 0  ;;  %s1286_s21 = smov 0   ;;  %s1288_s22 = smov 0  }
   0xb   :  { %s1290_s23 = smov 0   ;;  %s1292_s24 = smov 0  }
   0xc   :  { %s1294_s25 = smov 0   ;;  %s1296_s26 = smov 0  }
   0xd LB: > { %s1317_s27 = sadd.s32 4294967295, %s1238_s26   ;;  %s1576_s28 = sadd.s32 4294967294, %s1238_s26   ;;  %s1238_s26 = sphi %s1296_s26, %s28_s26   ;;  %s1234_s25 = sphi %s1294_s25, %s1603_s25   ;;  %s1230_s24 = sphi %s1292_s24, %s1602_s24   ;;  %s1226_s23 = sphi %s1290_s23, %s1601_s23   ;;  %s1222_s22 = sphi %s1288_s22, %s1600_s22   ;;  %s1218_s21 = sphi %s1286_s21, %s1599_s21  }
   0xe   : > { %p62_p0 = scmp.ne.s32.totalorder %s1222_s22, %s1218_s21  ;;  %p1574_p1 = scmp.eq.s32.totalorder %s1317_s27, 0 }
   0xf   : > { %p157_p3 = scmp.eq.s32.totalorder %s1576_s28, 1  ;;  %p807_p5 = scmp.ge.s32.totalorder %s1238_s26, 1 }
  0x10   : > { %p1328_p4 = por %p1574_p1, %p62_p0  ;;  %p220_p7 = scmp.lt.s32.totalorder %s1238_s26, 3 }
  0x11   : > { %p1333_p6 = por %p157_p3, %p62_p0  ;;  %s1240_s8 = smov [#allocation5]  }
  0x12   : > { %s1580_s29 = scalar_select %p1328_p4, 1, 0 }
  0x13   : > { %s1581_s30 = scalar_select %p1333_p6, 1, 0 }
  0x14   : > { %p1338_p8 = pnand %p807_p5, %p220_p7  ;;  %s232_s9 = sshll.u32 %s1240_s8, 4  ;;  %s233_s9 = int_to_ptr.vmem [resolvable:$true] %s232_s9 }
  0x15   : > { %s1241_s11 = smov [#allocation7]   ;;  %s1242_s13 = smov [#allocation8]  }
  0x16   : > { %p901_p9 = pneg %p1338_p8  ;;  %s245_s12 = sshll.u32 %s1241_s11, 4  ;;  %s246_s12 = int_to_ptr.vmem [resolvable:$true] %s245_s12 }
  0x17   : > { %s258_s14 = sshll.u32 %s1242_s13, 4  ;;  %s999_s15 = scalar_lea.vmem %s233_s9, 512  ;;  %s259_s14 = int_to_ptr.vmem [resolvable:$true] %s258_s14 }
  0x18   : > { %p1347_p11 = pnand %p901_p9, %p1574_p1  ;;  %p1000_p13 = scmp.ne.s32.totalorder %s233_s9, %s999_s15 }
  0x19   : > { %p1007_p5 = scmp.lt.s32.totalorder %s233_s9, %s233_s9  ;;  %p1008_p7 = scmp.lt.s32.totalorder %s999_s15, %s999_s15 }
  0x1a   : > { %p990_p12 = pneg %p1347_p11 }
  0x1b   : > { %p1009_p9 = por %p1008_p7, %p1007_p5 }
  0x1c   : > { %p1002_p0 = pnand %p1000_p13, %p990_p12 }
  0x1e   : > { %p1003_p3 = pneg %p1002_p0 }
  0x20   : > { %p1010_p10 = pnand %p1009_p9, %p1003_p3 }
  0x22   : > { %1013 = shalt.err (!%p1010_p10)
}
  0x23   : > { %s1243_s16 = smov 128   ;;  %s1244_s17 = smov 8  }
  0x24   : > { %s1584_s1 = sld [smem:[#allocation19_spill]]  ;;  %s1025_s20 = scalar_lea.vmem %s246_s12, 512 }
  0x25   : > { %p1026_p1 = scmp.ne.s32.totalorder %s246_s12, %s1025_s20  ;;  %p1033_p2 = scmp.lt.s32.totalorder %s246_s12, %s246_s12 }
  0x26   : > { %p1034_p6 = scmp.lt.s32.totalorder %s1025_s20, %s1025_s20 }
  0x27   : > { %p1028_p13 = pnand %p1026_p1, %p990_p12 }
  0x28   : > { %p1035_p5 = por %p1034_p6, %p1033_p2 }
  0x29   : > { %p1029_p0 = pneg %p1028_p13 }
  0x2a   : > { %904 = dma.hbm_to_vmem [thread:$0]  (!%p1347_p11), %s1584_s1, 512, %s233_s9, [#allocation6], %s1243_s16, %s1243_s16, %s1244_s17  }
  0x2b   : > { %p1036_p3 = pnand %p1035_p5, %p1029_p0 }
  0x2d   : > { %1039 = shalt.err (!%p1036_p3)
}
  0x2e   : > { %s1585_s2 = sld [smem:[#allocation20_spill]]  ;;  %s1051_s9 = scalar_lea.vmem %s259_s14, 512 }
  0x2f   : > { %p1052_p10 = scmp.ne.s32.totalorder %s259_s14, %s1051_s9  ;;  %p1059_p9 = scmp.lt.s32.totalorder %s259_s14, %s259_s14 }
  0x30   : > { %p1060_p13 = scmp.lt.s32.totalorder %s1051_s9, %s1051_s9 }
  0x31   : > { %p1054_p7 = pnand %p1052_p10, %p990_p12 }
  0x32   : > { %p1061_p4 = por %p1060_p13, %p1059_p9 }
  0x33   : > { %p1055_p1 = pneg %p1054_p7 }
  0x34   : > { %907 = dma.hbm_to_vmem [thread:$0]  (!%p1347_p11), %s1585_s2, 512, %s246_s12, [#allocation6], %s1243_s16, %s1243_s16, %s1244_s17  }
  0x35   : > { %p1062_p2 = pnand %p1061_p4, %p1055_p1 }
  0x37   : > { %1065 = shalt.err (!%p1062_p2)
}
  0x38   : > { %910 = dma.hbm_to_vmem [thread:$0]  (!%p1347_p11), %s1570_s3, 512, %s259_s14, [#allocation9], %s1243_s16, %s1243_s16, %s1244_s17  }
  0x39   : > { %s49_s12 = sadd.s32 1, %s1226_s23  ;;  %s40_s18 = sadd.s32 1, %s1234_s25 }
  0x3a   : > { %p56_p4 = scmp.ne.s32.totalorder %s1226_s23, %s1222_s22  ;;  %p42_p6 = scmp.ge.s32.totalorder %s40_s18, 2 }
  0x3b   : > { %p57_p12 = scmp.eq.s32.totalorder %s1238_s26, 0  ;;  %p1586_p0 = scmp.eq.s32.totalorder %s1317_s27, 1 }
  0x3c   : > { %p928_p3 = scmp.lt.s32.totalorder %s1238_s26, 2  ;;  %s1605_s18 = smov (%p42_p6, %s40_s18), 0 }
  0x3d   : > { %p1384_p5 = por %p1586_p0, %p56_p4  ;;  %p58_p10 = por %p57_p12, %p56_p4 }
  0x3e   : > { %s272_s19 = sand.u32 1, %s1226_s23   ;;  %s44_s20 = ssub.s32 %s1234_s25, %s1605_s18 }
  0x3f   : > { %p47_p7 = scmp.eq.s32.totalorder %s44_s20, 0  ;;  %s812_s14 = sshll.u32 %s272_s19, 3 }
  0x40   : > { %s813_s16 = sshll.u32 %s1234_s25, 7  ;;  %s276_s13 = scalar_lea.vmem [#allocation2], %s812_s14 }
  0x41   : > { %s1396_s17 = scalar_select %p47_p7, %s1226_s23, %s49_s12  }
  0x42   : > { %s282_s9 = scalar_lea.hbm %s1567_s0, %s813_s16  ;;  %s284_s15 = sshll.u32 %s276_s13, 4  ;;  %s285_s15 = int_to_ptr.vmem [resolvable:$true] %s284_s15 }
  0x43   : > { %p1403_p11 = pnand %p928_p3, %p58_p10  ;;  %s273_s1 = scalar_lea.sflag [#allocation3], %s272_s19 }
  0x44   : > { %s1079_s20 = scalar_lea.vmem %s285_s15, 128  ;;  %s1245_s12 = smov [#allocation2]  }
  0x45   : > { %p1068_p1 = pneg %p1403_p11  ;;  %p1080_p9 = scmp.ne.s32.totalorder %s285_s15, %s1079_s20 }
  0x46   : > { %s1084_s2 = sshll.u32 %s1245_s12, 4  ;;  %s1085_s2 = int_to_ptr.vmem [resolvable:$false] %s1084_s2 }
  0x47   : > { %p1082_p13 = pnand %p1080_p9, %p1068_p1  ;;  %s1086_s16 = scalar_lea.vmem %s1085_s2, 256 }
  0x48   : > { %p1087_p4 = scmp.lt.s32.totalorder %s285_s15, %s1085_s2  ;;  %p1088_p6 = scmp.lt.s32.totalorder %s1086_s16, %s1079_s20 }
  0x49   : > { %p1083_p2 = pneg %p1082_p13 }
  0x4a   : > { %p1089_p12 = por %p1088_p6, %p1087_p4 }
  0x4c   : > { %p1090_p0 = pnand %p1089_p12, %p1083_p2 }
  0x4e   : > { %1093 = shalt.err (!%p1090_p0)
}
  0x4f   : > { %914 = dma.hbm_to_vmem [thread:$0]  (!%p1403_p11), %s282_s9, 128, %s285_s15, %s273_s1  }
  0x50   : > { %293 = sbr.rel (%p1338_p8) target bundleno = 356 (0x164), region = 36  ;;  %s1414_s19 = sand.u32 (!%p1338_p8), 1, %s1222_s22  }
  0x51   : > { %s1417_s14 = sshll.u32 (!%p1338_p8), %s1414_s19, 3  ;;  %s296_s2 = scalar_lea.sflag (!%p1338_p8), [#allocation3], %s1414_s19 }
  0x52   : > { %s299_s8 = scalar_lea.vmem (!%p1338_p8), [#allocation2], %s1417_s14  ;;  %p1589_p3 = scmp.ne.s32.totalorder (!%p1338_p8), %s1580_s29, 0 }
  0x55   : > { %1197 = dma.done.wait (%p1589_p3), %s296_s2, 128  }
  0x56   : > { %1199 = vsyncadd (%p1589_p3), %s296_s2, 4294967168  ;;  %p1590_p10 = scmp.eq.s32.totalorder %s1317_s27, 0 }
  0x58   : > { %1201 = dma.done.wait (%p1590_p10), [#allocation6], 1024   ;;  %p1591_p8 = pmov %p1590_p10 }
  0x5a   : > { %1203 = vsyncadd (%p1591_p8), [#allocation6], 4294966272  ;;  %p1592_p7 = pmov %p1591_p8 }
  0x5c   : > { %1205 = dma.done.wait (%p1592_p7), [#allocation9], 512   ;;  %p1593_p11 = pmov %p1592_p7 }
  0x5d   : > { %v1246_v0 = vmov 0.0   ;;  %vm1247_vm0 = vmmov 0   ;;  %v354_v1 = vld [vmem:[#allocation5 + $0x18] sm:$0xff]  ;;  %v353_v2 = vld [vmem:[#allocation5 + $0x10] sm:$0xff]  ;;  %v352_v4 = vld [vmem:[#allocation5 + $0x8] sm:$0xff]  ;;  %vm355_vm1 = vcmask 261120  }
  0x5e   : > { %1207 = vsyncadd (%p1593_p11), [#allocation9], 4294966784  ;;  %848 = vmatprep.subr.mxu0 %v1246_v0  ;;  %859 = vmatprep.subr.mxu1 %v1246_v0  ;;  %v433_v3 = vld [vmem:[#allocation7 + $0x18] sm:$0xff]  ;;  %v432_v5 = vld [vmem:[#allocation7 + $0x10] sm:$0xff]  ;;  %s1440_s1 = sshll.u32 %s1230_s24, 7  ;;  %s335_s28 = scalar_lea.vmem [#allocation10], %s1417_s14 }
  0x5f   : > { %856 = vmatprep.mubr.msk.f32.mxu0 %vm1247_vm0, %v1246_v0  ;;  %867 = vmatprep.mubr.msk.f32.mxu1 %vm1247_vm0, %v1246_v0  ;;  %v431_v6 = vld [vmem:[#allocation7 + $0x8] sm:$0xff]  ;;  %v351_v7 = vld [vmem:[#allocation5] sm:$0xff]  ;;  %v350_v8 = vld [vmem:[%s299_s8] sm:$0xff]  ;;  %s605_s29 = sshll.u32 %s335_s28, 4  ;;  %s1577_s11 = scalar_lea.vmem [#allocation11], %s1417_s14  ;;  %s1453_s29 = int_to_ptr.vmem [resolvable:$true] %s605_s29 }
  0x60   : > { %849 = vmatpush3.msra.mxu0 %v354_v1  ;;  %860 = vmatpush3.msra.mxu1 %v433_v3  ;;  %v508_v9 = vld [vmem:[#allocation8 + $0x18] sm:$0xff]  ;;  %v430_v10 = vld [vmem:[#allocation7] sm:$0xff]  ;;  %v507_v11 = vld [vmem:[#allocation8 + $0x10] sm:$0xff]  ;;  %s619_s9 = sshll.u32 %s1577_s11, 4  ;;  %s1451_s20 = scalar_lea.hbm %s1571_s4, %s1440_s1  ;;  %s1462_s9 = int_to_ptr.vmem [resolvable:$true] %s619_s9 }
  0x61   : > { %850 = vmatprep.subr.mxu0 %v1246_v0  ;;  %861 = vmatprep.subr.mxu1 %v1246_v0  ;;  %v506_v12 = vld [vmem:[#allocation8 + $0x8] sm:$0xff]  ;;  %v505_v13 = vld [vmem:[#allocation8] sm:$0xff]  ;;  %s1460_s16 = scalar_lea.hbm %s1572_s5, %s1440_s1  ;;  %s581_s2 = scalar_lea.sflag [#allocation4], %s1414_s19 }
  0x62   : > { %851 = vmatpush3.msra.mxu0 %v353_v2  ;;  %862 = vmatpush3.msra.mxu1 %v432_v5  ;;  %s1094_s8 = scalar_lea.vmem %s1453_s29, 128  ;;  %s1248_s13 = smov [#allocation10]  }
  0x63   : > { %852 = vmatprep.subr.mxu0 %v1246_v0  ;;  %863 = vmatprep.subr.mxu1 %v1246_v0  ;;  %p1095_p1 = scmp.ne.s32.totalorder %s1453_s29, %s1094_s8  ;;  %s1098_s15 = sshll.u32 %s1248_s13, 4  ;;  %s1099_s15 = int_to_ptr.vmem [resolvable:$false] %s1098_s15 }
  0x64   : > { %853 = vmatpush3.msra.mxu0 %v352_v4  ;;  %864 = vmatpush3.msra.mxu1 %v431_v6  ;;  %s1100_s7 = scalar_lea.vmem %s1099_s15, 256  ;;  %p1101_p2 = scmp.lt.s32.totalorder %s1453_s29, %s1099_s15 }
  0x65   : > { %854 = vmatprep.subr.mxu0 %v1246_v0  ;;  %865 = vmatprep.subr.mxu1 %v1246_v0  ;;  %p1096_p9 = pnand %p1095_p1, %p1384_p5  ;;  %p1102_p4 = scmp.lt.s32.totalorder %s1100_s7, %s1094_s8 }
  0x66   : > { %855 = vmatpush3.msra.mxu0 %v351_v7  ;;  %866 = vmatpush3.msra.mxu1 %v430_v10 }
  0x67   : > { %857 = vmatmul.mubr.msk.f32.vlgmr.msra.gmra.mxu0 %vm355_vm1, %v350_v8  ;;  %870 = vmatprep.subr.mxu0 %v1246_v0  ;;  %p1097_p13 = pneg %p1096_p9  ;;  %p1103_p6 = por %p1102_p4, %p1101_p2 }
  0x68   : > { %871 = vmatpush3.msra.mxu0 %v508_v9  ;;  %868 = vmatmul.mubr.msk.f32.vlgmr.msra.gmra.mxu1 %vm355_vm1, %v350_v8 }
  0x69   : > { %872 = vmatprep.subr.mxu0 %v1246_v0  ;;  %878 = vmatprep.mubr.msk.f32.mxu0 %vm1247_vm0, %v1246_v0  ;;  %p1104_p12 = pnand %p1103_p6, %p1097_p13 }
  0x6a   : > { %873 = vmatpush3.msra.mxu0 %v507_v11 }
  0x6b   : > { %874 = vmatprep.subr.mxu0 %v1246_v0 }
  0x6c   : > { %875 = vmatpush3.msra.mxu0 %v506_v12 }
  0x6d   : > { %876 = vmatprep.subr.mxu0 %v1246_v0 }
  0x6e   : > { %877 = vmatpush3.msra.mxu0 %v505_v13 }
  0x6f   : > { %879 = vmatmul.mubr.msk.f32.vlgmr.msra.gmra.mxu0 %vm355_vm1, %v350_v8 }
 0x127   : > { %v425_v14 = vpop.f32.mrf.mxu0 }
 0x128   : > { %429 = vst.msk [vmem:[%s335_s28] sm:$0xff] %vm355_vm1, %v425_v14  ;;  %v500_v16 = vpop.f32.mrf.mxu1 }
 0x129   : > { %v858_v15 = vpop.f32.mrf.mxu0 }
 0x12a   : > { %1107 = shalt.err (!%p1104_p12)
}
 0x12b   : > { %s1108_s28 = scalar_lea.hbm %s1451_s20, 128  ;;  %s1112_s12 = scalar_lea.hbm %s1571_s4, 256 }
 0x12c   : > { %p1109_p0 = scmp.ne.s32.totalorder %s1451_s20, %s1108_s28  ;;  %p1113_p8 = scmp.lt.s32.totalorder %s1451_s20, %s1571_s4 }
 0x12d   : > { %p1114_p7 = scmp.lt.s32.totalorder %s1112_s12, %s1108_s28 }
 0x12e   : > { %p1110_p3 = pnand %p1109_p0, %p1384_p5 }
 0x12f   : > { %p1115_p11 = por %p1114_p7, %p1113_p8 }
 0x130   : > { %p1111_p10 = pneg %p1110_p3 }
 0x132   : > { %p1116_p1 = pnand %p1115_p11, %p1111_p10 }
 0x134   : > { %1119 = shalt.err (!%p1116_p1)
}
 0x135   : > { %895 = dma.vmem_to_hbm [thread:$0]  (%p1384_p5), %s1453_s29, 128, %s1451_s20, %s581_s2   ;;  %v869_v17 = vpop.f32.mrf.mxu1 }
 0x136   : > { %s1594_s7 = scalar_lea.vmem [#allocation11], %s1417_s14  ;;  %s349_s11 = scalar_lea.vmem [#allocation13], %s1417_s14 }
 0x137   : > { %504 = vst.msk [vmem:[%s1594_s7] sm:$0xff] %vm355_vm1, %v500_v16  ;;  %s633_s8 = sshll.u32 %s349_s11, 4  ;;  %s1595_s15 = sand.u32 1, %s1317_s27   ;;  %s634_s8 = int_to_ptr.vmem [resolvable:$true] %s633_s8 }
 0x138   : > { %s1493_s28 = scalar_lea.sflag [#allocation12], %s1595_s15  ;;  %s1120_s19 = scalar_lea.vmem %s1462_s9, 128 }
 0x139   : > { %p1121_p9 = scmp.ne.s32.totalorder %s1462_s9, %s1120_s19  ;;  %s1249_s24 = smov [#allocation11]  }
 0x13a   : > { %s1124_s12 = sshll.u32 %s1249_s24, 4  ;;  %s1125_s12 = int_to_ptr.vmem [resolvable:$false] %s1124_s12 }
 0x13b   : > { %p1122_p13 = pnand %p1121_p9, %p1384_p5  ;;  %s1126_s13 = scalar_lea.vmem %s1125_s12, 256 }
 0x13c   : > { %p1127_p4 = scmp.lt.s32.totalorder %s1462_s9, %s1125_s12  ;;  %p1128_p6 = scmp.lt.s32.totalorder %s1126_s13, %s1120_s19 }
 0x13d   : > { %p1123_p2 = pneg %p1122_p13 }
 0x13e   : > { %p1129_p12 = por %p1128_p6, %p1127_p4 }
 0x140   : > { %p1130_p0 = pnand %p1129_p12, %p1123_p2 }
 0x142   : > { %1133 = shalt.err (!%p1130_p0)
}
 0x143   : > { %s1134_s27 = scalar_lea.hbm %s1460_s16, 128  ;;  %s1138_s2 = scalar_lea.hbm %s1572_s5, 256 }
 0x144   : > { %p1135_p3 = scmp.ne.s32.totalorder %s1460_s16, %s1134_s27  ;;  %p1139_p7 = scmp.lt.s32.totalorder %s1460_s16, %s1572_s5 }
 0x145   : > { %p1140_p11 = scmp.lt.s32.totalorder %s1138_s2, %s1134_s27 }
 0x146   : > { %p1136_p10 = pnand %p1135_p3, %p1384_p5 }
 0x147   : > { %p1141_p1 = por %p1140_p11, %p1139_p7 }
 0x148   : > { %p1137_p8 = pneg %p1136_p10 }
 0x14a   : > { %p1142_p9 = pnand %p1141_p1, %p1137_p8 }
 0x14c   : > { %1145 = shalt.err (!%p1142_p9)
}
 0x14d   : > { %896 = dma.vmem_to_hbm [thread:$0]  (%p1384_p5), %s1462_s9, 128, %s1460_s16, %s1493_s28   ;;  %v575_v18 = vpop.f32.mrf.mxu0 }
 0x14e   : > { %s1520_s12 = scalar_lea.hbm %s1573_s6, %s1440_s1  ;;  %579 = vst.msk [vmem:[%s349_s11] sm:$0xff] %vm355_vm1, %v575_v18  ;;  %s1146_s13 = scalar_lea.vmem %s634_s8, 128 }
 0x14f   : > { %v880_v19 = vpop.f32.mrf.mxu0  ;;  %p1147_p13 = scmp.ne.s32.totalorder %s634_s8, %s1146_s13  ;;  %s1250_s27 = smov [#allocation13]  }
 0x150   : > { %s1150_s29 = sshll.u32 %s1250_s27, 4  ;;  %s1151_s29 = int_to_ptr.vmem [resolvable:$false] %s1150_s29 }
 0x151   : > { %p1148_p2 = pnand %p1147_p13, %p1384_p5  ;;  %s1152_s9 = scalar_lea.vmem %s1151_s29, 256 }
 0x152   : > { %p1153_p6 = scmp.lt.s32.totalorder %s634_s8, %s1151_s29  ;;  %p1154_p12 = scmp.lt.s32.totalorder %s1152_s9, %s1146_s13 }
 0x153   : > { %p1149_p4 = pneg %p1148_p2 }
 0x154   : > { %p1155_p0 = por %p1154_p12, %p1153_p6 }
 0x156   : > { %p1156_p3 = pnand %p1155_p0, %p1149_p4 }
 0x158   : > { %1159 = shalt.err (!%p1156_p3)
}
 0x159   : > { %s1160_s14 = scalar_lea.hbm %s1520_s12, 128  ;;  %s1164_s11 = scalar_lea.hbm %s1573_s6, 256 }
 0x15a   : > { %p1161_p10 = scmp.ne.s32.totalorder %s1520_s12, %s1160_s14  ;;  %p1165_p11 = scmp.lt.s32.totalorder %s1520_s12, %s1573_s6 }
 0x15b   : > { %p1166_p1 = scmp.lt.s32.totalorder %s1164_s11, %s1160_s14 }
 0x15c   : > { %p1162_p8 = pnand %p1161_p10, %p1384_p5 }
 0x15d   : > { %p1167_p9 = por %p1166_p1, %p1165_p11 }
 0x15e   : > { %p1163_p7 = pneg %p1162_p8 }
 0x160   : > { %p1168_p13 = pnand %p1167_p9, %p1163_p7 }
 0x162   : > { %1171 = shalt.err (!%p1168_p13)
}
 0x163   : > { %897 = dma.vmem_to_hbm [thread:$0]  (%p1384_p5), %s634_s8, 128, %s1520_s12, %s1493_s28  }
 0x164 PF: > { %s645_s7 = sand.u32 1, %s1218_s21   ;;  %p1596_p2 = scmp.ne.s32.totalorder %s1581_s30, 0 }
 0x165   : > { %p1597_p4 = scmp.ge.s32.totalorder %s1238_s26, 2  ;;  %s646_s15 = scalar_lea.sflag [#allocation4], %s645_s7 }
 0x167   : > { %p916_p6 = pnand %p1597_p4, %p1596_p2 }
 0x169   : > { %p917_p12 = pneg %p916_p6 }
 0x16b   : > { %1209 = dma.done.wait (%p917_p12), %s646_s15, 128  }
 0x16c   : > { %1211 = vsyncadd (%p917_p12), %s646_s15, 4294967168  ;;  %s1598_s19 = sadd.s32 4294967294, %s1238_s26  }
 0x16d   : > { %s654_s24 = sand.u32 1, %s1598_s19  }
 0x16e   : > { %s655_s13 = scalar_lea.sflag [#allocation12], %s654_s24 }
 0x16f   : > { %1213 = dma.done.wait (%p917_p12), %s655_s13, 256  }
 0x170   : > { %1215 = vsyncadd (%p917_p12), %s655_s13, 4294967040  ;;  %s28_s26 = sadd.s32 1, %s1238_s26   ;;  %s1599_s21 = smov %s1222_s22 }
 0x171   : > { %p25_p5 = scmp.ge.s32.totalorder %s28_s26, 4   ;;  %s1600_s22 = smov %s1226_s23 }
 0x172   : > { %s1601_s23 = smov %s1396_s17  ;;  %s1602_s24 = smov %s1234_s25 }
 0x173   : > { %s1603_s25 = smov %s1605_s18  ;;  %27 = sbr.rel (!%p25_p5) target bundleno = 13 (0xd), region = 125 }
 0x178   :  { %669 = vsyncpa [#allocation3], 1 }
 0x179   :  { %671 = vsyncpa [#allocation3 + $0x1], 1 }
 0x17a   :  { %672 = vsyncpa [#allocation6], 1 }
 0x17b   :  { %673 = vsyncpa [#allocation9], 1 }
 0x17c   :  { %674 = vsyncpa [#allocation4], 1 }
 0x17d   :  { %676 = vsyncpa [#allocation4 + $0x1], 1 }
 0x17e   :  { %677 = vsyncpa [#allocation12], 1 }
 0x17f   :  { %679 = vsyncpa [#allocation12 + $0x1], 1 }

</bundles_post_ra>
